<compile_context>
chip_gen: v7x
topology: tpu7x:2x2x1
jax: 0.10.0
libtpu: 0.0.40
codegen_flags: <defaults>
</compile_context>

<pallas_src>
import functools

import jax
import jax.numpy as jnp
from jax.experimental import pallas as pl
from jax.experimental.pallas import tpu as pltpu

NUM_CLASSES = 8                        # real number of output classes (no lane padding)
VMEM_LIMIT_BYTES = 32 * 1024 * 1024    # explicit scoped-VMEM limit: safe on v5e/v6e/v7x
MAX_TK = 16384                         # per-step DMA already amortizes ~0.35us step overhead


def choose_tile_k(batch, f_total, *, vmem_limit_bytes=VMEM_LIMIT_BYTES, max_tk=MAX_TK):
    """Pick the K tile from the VMEM budget.

    Double-buffered bf16 tiles cost 2 * (B + NC) * tk * 2 bytes; keep them
    under ~half the scoped limit (headroom for acc/logits/compiler scratch).
    If the whole (128-padded) feature length fits, use a single grid step.
    """
    budget = vmem_limit_bytes // 2
    tk_budget = budget // (4 * (batch + NUM_CLASSES))
    tk_budget = max(128, (tk_budget // 128) * 128)
    tk = min(tk_budget, max_tk)
    f_pad128 = f_total + (-f_total) % 128
    if f_pad128 <= tk:
        return f_pad128                # everything fits: one grid step, no K tiling
    return tk


def _network_kernel(feat_ref,          # VMEM [B, tk] bf16
                    w_ref,             # VMEM [NC, tk] bf16 (tile-major, contiguous DMA)
                    b_ref,             # VMEM [1, NC] f32
                    labels_ref,        # VMEM [B, 1] int32
                    logits_ref,        # VMEM [B, NC] f32 out
                    loss_ref,          # SMEM [1, 1] f32 out
                    acc_ref,           # VMEM [B, NC] f32 scratch
                    *, batch, compute_loss):
    k = pl.program_id(0)

    @pl.when(k == 0)
    def _():
        acc_ref[...] = jnp.zeros_like(acc_ref)

    # (B, tk) contracted with (NC, tk) on the F axis -> (B, NC), f32 acc on MXU.
    acc_ref[...] += jax.lax.dot_general(
        feat_ref[...], w_ref[...],
        dimension_numbers=(((1,), (1,)), ((), ())),
        preferred_element_type=jnp.float32)

    @pl.when(k == pl.num_programs(0) - 1)
    def _():
        logits = acc_ref[...] + b_ref[...]            # (B, NC) f32
        logits_ref[...] = logits

        if compute_loss:
            # CrossEntropyLoss = mean_i( logsumexp(logits_i) - logits_i[y_i] ), in f32.
            m = jnp.max(logits, axis=-1, keepdims=True)
            lse = m + jnp.log(jnp.sum(jnp.exp(logits - m), axis=-1, keepdims=True))
            log_probs = logits - lse                  # (B, NC)
            col_ids = jax.lax.broadcasted_iota(jnp.int32, (1, NUM_CLASSES), 1)
            # Vectorized label pick: one compare/select/reduce regardless of B.
            picked = jnp.sum(jnp.where(col_ids == labels_ref[...], log_probs, 0.0))
            loss_ref[0, 0] = -picked / batch
        else:
            loss_ref[0, 0] = jnp.float32(0.0)


def prepare_weights(w, tk):
    """One-time HBM pre-tiling: pad [NC, F] to F_pad = kt*tk and reorder to
    tile-major [kt, NC, tk] so each grid step's weight DMA is one contiguous
    chunk (instead of NC rows strided by F_total)."""
    nc, f = w.shape
    assert nc == NUM_CLASSES, w.shape
    f_pad = f + (-f) % tk
    if f_pad != f:
        w = jnp.pad(w, ((0, 0), (0, f_pad - f)))
    kt = f_pad // tk
    return jnp.transpose(w.reshape(nc, kt, tk), (1, 0, 2)).astype(jnp.bfloat16)


def _network_forward_impl(im_data, dem_data, img_data, w_tiled, b, gt_data=None, *, tk):
    """Mirrors Network.forward: returns (pre_label, CE loss or None)."""
    B = im_data.shape[0]
    kt, nc, tk_w = w_tiled.shape
    assert nc == NUM_CLASSES and tk_w == tk, (w_tiled.shape, tk)
    f_pad = kt * tk

    # Flatten + cast to bf16 (MXU-native) and concatenate ONCE; single feature
    # stream -> one double-buffered pipeline input.
    feat = jnp.concatenate(
        [x.reshape(B, -1) for x in (im_data, dem_data, img_data)],
        axis=-1).astype(jnp.bfloat16)
    f_total = feat.shape[1]
    assert f_total <= f_pad and f_pad - f_total < tk, (f_total, f_pad, tk)
    if f_pad != f_total:
        feat = jnp.pad(feat, ((0, 0), (0, f_pad - f_total)))

    compute_loss = gt_data is not None
    if compute_loss:
        labels = gt_data.reshape(-1).astype(jnp.int32).reshape(B, 1)   # gt_data.view(-1)
    else:
        labels = jnp.zeros((B, 1), jnp.int32)

    kernel = functools.partial(_network_kernel, batch=B, compute_loss=compute_loss)

    grid_spec = pltpu.PrefetchScalarGridSpec(
        num_scalar_prefetch=0,
        grid=(kt,),
        in_specs=[
            pl.BlockSpec((B, tk), lambda k: (0, k)),                    # features
            pl.BlockSpec((None, NUM_CLASSES, tk), lambda k: (k, 0, 0)), # tile-major weight
            pl.BlockSpec((1, NUM_CLASSES), lambda k: (0, 0)),           # bias (resident)
            pl.BlockSpec((B, 1), lambda k: (0, 0)),                     # labels (resident)
        ],
        out_specs=[
            # Constant block index across the reduction axis: standard
            # accumulator pattern, written back to HBM only after the last step.
            pl.BlockSpec((B, NUM_CLASSES), lambda k: (0, 0)),
            pl.BlockSpec(memory_space=pltpu.MemorySpace.SMEM),          # scalar loss
        ],
        scratch_shapes=[pltpu.VMEM((B, NUM_CLASSES), jnp.float32)],
    )

    cost = pl.CostEstimate(
        flops=2 * B * f_pad * NUM_CLASSES,
        transcendentals=B * NUM_CLASSES if compute_loss else 0,
        bytes_accessed=(B * f_pad * 2                 # bf16 features
                        + NUM_CLASSES * f_pad * 2     # bf16 weights
                        + NUM_CLASSES * 4             # bias
                        + B * NUM_CLASSES * 4         # logits out
                        + B * 4 + 4))                 # labels + loss

    logits, loss = pl.pallas_call(
        kernel,
        out_shape=(
            jax.ShapeDtypeStruct((B, NUM_CLASSES), jnp.float32),
            jax.ShapeDtypeStruct((1, 1), jnp.float32),
        ),
        grid_spec=grid_spec,
        compiler_params=pltpu.CompilerParams(
            dimension_semantics=("arbitrary",),        # single K reduction axis
            vmem_limit_bytes=VMEM_LIMIT_BYTES,
        ),
        cost_estimate=cost,
    )(feat, w_tiled, b, labels)

    pre_label = logits
    if not compute_loss:
        return pre_label, None
    return pre_label, loss[0, 0]


network_forward = jax.jit(_network_forward_impl, static_argnames=("tk",))


def init_params(key, f_total):
    """Deterministic linear-head params: w is [NC, F_total] bf16 (class on
    sublanes, F lane-dense), b is [1, NC] f32."""
    kw, kb = jax.random.split(key)
    w = (jax.random.normal(kw, (NUM_CLASSES, f_total), jnp.float32) * 0.02
         ).astype(jnp.bfloat16)
    b = jax.random.normal(kb, (1, NUM_CLASSES), jnp.float32) * 0.02
    return w, b


if __name__ == "__main__":
    key = jax.random.PRNGKey(0)
    k_im, k_dem, k_img, k_gt, k_param = jax.random.split(key, 5)

    B, C, H, W = 2, 4, 16, 16                     # NCHW, small synthetic shapes
    im_data = jax.random.normal(k_im, (B, C, H, W), jnp.float32)
    dem_data = jax.random.normal(k_dem, (B, C, H, W), jnp.float32)
    img_data = jax.random.normal(k_img, (B, C, H, W), jnp.float32)
    gt_data = jax.random.randint(k_gt, (B, 1), 0, NUM_CLASSES, jnp.int32)

    F_total = 3 * C * H * W
    w, b = init_params(k_param, F_total)

    tk = choose_tile_k(B, F_total)                # VMEM-budget-derived K tile
    w_tiled = prepare_weights(w, tk)              # one-time tile-major HBM layout

    pre_label, loss = network_forward(im_data, dem_data, img_data, w_tiled, b,
                                      gt_data, tk=tk)
    jax.block_until_ready((pre_label, loss))

    # plain-JAX reference (same bf16 operands, f32 accumulation)
    feat_cat = jnp.concatenate(
        [x.reshape(B, -1) for x in (im_data, dem_data, img_data)], axis=-1
    ).astype(jnp.bfloat16)
    ref_logits = jax.lax.dot_general(
        feat_cat, w, (((1,), (1,)), ((), ())),
        preferred_element_type=jnp.float32) + b
    ref_logp = jax.nn.log_softmax(ref_logits, axis=-1)
    ref_loss = -jnp.mean(ref_logp[jnp.arange(B), gt_data.reshape(-1)])

    assert jnp.allclose(pre_label, ref_logits, atol=5e-3, rtol=1e-3), "logits mismatch"
    assert jnp.allclose(loss, ref_loss, atol=5e-3, rtol=1e-3), "loss mismatch"
    print("KERNEL_OK")
</pallas_src>

<mosaic_0001>
module attributes {stable_mosaic.version = 11 : i64} {
  func.func @_network_kernel(%arg0: i32, %arg1: memref<2x3072xbf16, #tpu.memory_space<vmem>>, %arg2: memref<1x8x3072xbf16, #tpu.memory_space<vmem>>, %arg3: memref<1x8xf32, #tpu.memory_space<vmem>>, %arg4: memref<2x1xi32, #tpu.memory_space<vmem>>, %arg5: memref<2x8xf32, #tpu.memory_space<vmem>>, %arg6: memref<1x1xf32, #tpu.memory_space<smem>>, %arg7: memref<2x8xf32, #tpu.memory_space<vmem>>) attributes {dimension_semantics = [#tpu.dimension_semantics<arbitrary>], iteration_bounds = array<i64: 1>, scalar_prefetch = 0 : i64, scratch_operands = 1 : i64, tpu.core_type = #tpu.core_type<tc>, window_params = [{transform_indices = @transform_0, window_bounds = array<i64: 2, 3072>}, {transform_indices = @transform_1, window_bounds = array<i64: 1, 8, 3072>}, {pipeline_mode = #tpu.pipeline_mode<synchronous>, transform_indices = @transform_2, window_bounds = array<i64: 1, 8>}, {pipeline_mode = #tpu.pipeline_mode<synchronous>, transform_indices = @transform_3, window_bounds = array<i64: 2, 1>}, {pipeline_mode = #tpu.pipeline_mode<synchronous>, transform_indices = @transform_4, window_bounds = array<i64: 2, 8>}, {transform_indices = @transform_5, window_bounds = array<i64: 1, 1>}]} {
    %c0_i32 = arith.constant 0 : i32
    %0 = arith.cmpi eq, %arg0, %c0_i32 : i32
    %1 = arith.extui %0 : i1 to i32
    %c0_i32_0 = arith.constant 0 : i32
    %2 = arith.cmpi ne, %1, %c0_i32_0 : i32
    scf.if %2 {
      %cst_11 = arith.constant 0.000000e+00 : f32
      %13 = vector.broadcast %cst_11 : f32 to vector<2x8xf32>
      %c0_12 = arith.constant 0 : index
      %c0_13 = arith.constant 0 : index
      %14 = vector.load %arg7[%c0_12, %c0_13] : memref<2x8xf32, #tpu.memory_space<vmem>>, vector<2x8xf32>
      tpu.vector_store %arg7[%c0_12, %c0_13], %13 {strides = array<i32>} : memref<2x8xf32, #tpu.memory_space<vmem>>, vector<2x8xf32>,
    } else {
    }
    %c0 = arith.constant 0 : index
    %c0_1 = arith.constant 0 : index
    %3 = vector.load %arg7[%c0, %c0_1] : memref<2x8xf32, #tpu.memory_space<vmem>>, vector<2x8xf32>
    %c0_2 = arith.constant 0 : index
    %c0_3 = arith.constant 0 : index
    %4 = vector.load %arg1[%c0_2, %c0_3] : memref<2x3072xbf16, #tpu.memory_space<vmem>>, vector<2x3072xbf16>
    %c0_4 = arith.constant 0 : index
    %c0_5 = arith.constant 0 : index
    %c0_6 = arith.constant 0 : index
    %5 = vector.load %arg2[%c0_4, %c0_5, %c0_6] : memref<1x8x3072xbf16, #tpu.memory_space<vmem>>, vector<1x8x3072xbf16>
    %6 = vector.shape_cast %5 : vector<1x8x3072xbf16> to vector<8x3072xbf16>
    %cst = arith.constant dense<0.000000e+00> : vector<2x8xf32>
    %7 = tpu.matmul %4, %6, %cst {dimension_numbers = #tpu.dot_dimension_numbers<[1], [1], [0], [0], [0, 0, 1, 0], [], []>} : vector<2x3072xbf16>, vector<8x3072xbf16>, vector<2x8xf32> -> vector<2x8xf32>
    %8 = arith.addf %3, %7 : vector<2x8xf32>
    %c0_7 = arith.constant 0 : index
    %c0_8 = arith.constant 0 : index
    %9 = vector.load %arg7[%c0_7, %c0_8] : memref<2x8xf32, #tpu.memory_space<vmem>>, vector<2x8xf32>
    tpu.vector_store %arg7[%c0_7, %c0_8], %8 {strides = array<i32>} : memref<2x8xf32, #tpu.memory_space<vmem>>, vector<2x8xf32>,
    %c0_i32_9 = arith.constant 0 : i32
    %10 = arith.cmpi eq, %arg0, %c0_i32_9 : i32
    %11 = arith.extui %10 : i1 to i32
    %c0_i32_10 = arith.constant 0 : i32
    %12 = arith.cmpi ne, %11, %c0_i32_10 : i32
    scf.if %12 {
      %c0_11 = arith.constant 0 : index
      %c0_12 = arith.constant 0 : index
      %13 = vector.load %arg7[%c0_11, %c0_12] : memref<2x8xf32, #tpu.memory_space<vmem>>, vector<2x8xf32>
      %c0_13 = arith.constant 0 : index
      %c0_14 = arith.constant 0 : index
      %14 = vector.load %arg3[%c0_13, %c0_14] : memref<1x8xf32, #tpu.memory_space<vmem>>, vector<1x8xf32>
      %15 = vector.broadcast %14 : vector<1x8xf32> to vector<2x8xf32>
      %16 = arith.addf %13, %15 : vector<2x8xf32>
      %c0_15 = arith.constant 0 : index
      %c0_16 = arith.constant 0 : index
      %17 = vector.load %arg5[%c0_15, %c0_16] : memref<2x8xf32, #tpu.memory_space<vmem>>, vector<2x8xf32>
      tpu.vector_store %arg5[%c0_15, %c0_16], %16 {strides = array<i32>} : memref<2x8xf32, #tpu.memory_space<vmem>>, vector<2x8xf32>,
      %cst_17 = arith.constant dense<0xFF800000> : vector<2xf32>
      %18 = vector.multi_reduction <maximumf>, %16, %cst_17 [1] : vector<2x8xf32> to vector<2xf32>
      %19 = vector.shape_cast %18 : vector<2xf32> to vector<2x1xf32>
      %20 = vector.broadcast %19 : vector<2x1xf32> to vector<2x8xf32>
      %21 = arith.subf %16, %20 : vector<2x8xf32>
      %22 = math.exp %21 : vector<2x8xf32>
      %cst_18 = arith.constant dense<0.000000e+00> : vector<2xf32>
      %23 = vector.multi_reduction <add>, %22, %cst_18 [1] : vector<2x8xf32> to vector<2xf32>
      %24 = vector.shape_cast %23 : vector<2xf32> to vector<2x1xf32>
      %25 = math.log %24 : vector<2x1xf32>
      %26 = arith.addf %19, %25 : vector<2x1xf32>
      %27 = vector.broadcast %26 : vector<2x1xf32> to vector<2x8xf32>
      %28 = arith.subf %16, %27 : vector<2x8xf32>
      %29 = tpu.iota {dimensions = array<i32: 1>} : vector<1x8xi32>
      %c0_19 = arith.constant 0 : index
      %c0_20 = arith.constant 0 : index
      %30 = vector.load %arg4[%c0_19, %c0_20] : memref<2x1xi32, #tpu.memory_space<vmem>>, vector<2x1xi32>
      %31 = vector.broadcast %29 : vector<1x8xi32> to vector<2x8xi32>
      %32 = vector.broadcast %30 : vector<2x1xi32> to vector<2x8xi32>
      %33 = arith.cmpi eq, %31, %32 : vector<2x8xi32>
      %cst_21 = arith.constant 0.000000e+00 : f32
      %34 = vector.broadcast %cst_21 : f32 to vector<2x8xf32>
      %35 = arith.select %33, %28, %34 : vector<2x8xi1>, vector<2x8xf32>
      %36 = vector.shape_cast %35 : vector<2x8xf32> to vector<1x2x8xf32>
      %cst_22 = arith.constant dense<0.000000e+00> : vector<1xf32>
      %37 = vector.multi_reduction <add>, %36, %cst_22 [1, 2] : vector<1x2x8xf32> to vector<1xf32>
      %38 = vector.shape_cast %37 : vector<1xf32> to vector<1x1x1xf32>
      %39 = vector.extract %38[0, 0, 0] : f32 from vector<1x1x1xf32>
      %cst_23 = arith.constant 0.000000e+00 : f32
      %40 = arith.subf %cst_23, %39 : f32
      %cst_24 = arith.constant 2.000000e+00 : f32
      %41 = arith.divf %40, %cst_24 : f32
      %c0_25 = arith.constant 0 : index
      %c0_26 = arith.constant 0 : index
      %42 = memref.load %arg6[%c0_25, %c0_26] : memref<1x1xf32, #tpu.memory_space<smem>>
      memref.store %41, %arg6[%c0_25, %c0_26] : memref<1x1xf32, #tpu.memory_space<smem>>
    } else {
    }
    return
  }
  func.func @transform_0(%arg0: i32) -> (i32, i32) {
    %c0_i32 = arith.constant 0 : i32
    %c0_i32_0 = arith.constant 0 : i32
    return %c0_i32, %arg0 : i32, i32
  }
  func.func @transform_1(%arg0: i32) -> (i32, i32, i32) {
    %c0_i32 = arith.constant 0 : i32
    %c0_i32_0 = arith.constant 0 : i32
    %c0_i32_1 = arith.constant 0 : i32
    return %arg0, %c0_i32, %c0_i32_0 : i32, i32, i32
  }
  func.func @transform_2(%arg0: i32) -> (i32, i32) {
    %c0_i32 = arith.constant 0 : i32
    %c0_i32_0 = arith.constant 0 : i32
    %c0_i32_1 = arith.constant 0 : i32
    return %c0_i32, %c0_i32_0 : i32, i32
  }
  func.func @transform_3(%arg0: i32) -> (i32, i32) {
    %c0_i32 = arith.constant 0 : i32
    %c0_i32_0 = arith.constant 0 : i32
    %c0_i32_1 = arith.constant 0 : i32
    return %c0_i32, %c0_i32_0 : i32, i32
  }
  func.func @transform_4(%arg0: i32) -> (i32, i32) {
    %c0_i32 = arith.constant 0 : i32
    %c0_i32_0 = arith.constant 0 : i32
    %c0_i32_1 = arith.constant 0 : i32
    return %c0_i32, %c0_i32_0 : i32, i32
  }
  func.func @transform_5(%arg0: i32) -> (i32, i32) {
    %c0_i32 = arith.constant 0 : i32
    %c0_i32_0 = arith.constant 0 : i32
    %c0_i32_1 = arith.constant 0 : i32
    return %c0_i32, %c0_i32_0 : i32, i32
  }
}

</mosaic_0001>

<bundles_post_ra>
// kernel: _network_forward_impl.1
= control target key start
LH: loop header
LB: loop body
LE: loop exit
PB: predicated region body
PF: predicated region fallthrough
CT: control target
= control target key end

     0   :  { %11 = vsyncpa [#allocation4], 0  ;;  %v51_v2 = vlaneseq  ;;  %v963_v9 = vmov 1966171168   ;;  %s1101_s0 = inlined_call_operand.vmem [shape: bf16[2,3072], index: 0, kind: input, shape index: {}]   ;;  %s1102_s1 = inlined_call_operand.vmem [shape: bf16[1,8,3072], index: 1, kind: input, shape index: {}]   ;;  %s1103_s2 = inlined_call_operand.vmem [shape: f32[1,8], index: 2, kind: input, shape index: {}]   ;;  %s1104_s3 = inlined_call_operand.vmem [shape: s32[2,1], index: 3, kind: input, shape index: {}]   ;;  %s1105_s4 = inlined_call_operand.hbm [shape: f32[2,8], index: 4, kind: output, shape index: {0}]   ;;  %s1106_s5 = inlined_call_operand.hbm [shape: f32[1,1], index: 5, kind: output, shape index: {1}]  }
   0x1   :  { %v32_v0 = vld [vmem:[%s1102_s1] sm:$0xff]  ;;  %v33_v1 = vld [vmem:[%s1102_s1 + $0x8] sm:$0xff]  ;;  %v34_v7 = vld [vmem:[%s1102_s1 + $0x10] sm:$0xff]  ;;  %v49_v10 = vunpack.c.l.s4 %v963_v9 }
   0x2   :  { %v863_v3 = vcombine.high %v32_v0, %v32_v0  ;;  %v862_v4 = vcombine.low %v32_v0, %v32_v0  ;;  %v865_v5 = vcombine.high %v33_v1, %v33_v1  ;;  %v864_v6 = vcombine.low %v33_v1, %v33_v1  ;;  %v35_v8 = vld [vmem:[%s1102_s1 + $0x18] sm:$0xff]  ;;  %v29_v12 = vld [vmem:[%s1101_s0] sm:$0xff] }
   0x3   :  { %v52_v11 = vshrl.u32 %v51_v2, 7  ;;  %v867_v13 = vcombine.high %v34_v7, %v34_v7  ;;  %v869_v14 = vcombine.high %v35_v8, %v35_v8  ;;  %v47_v15 = vcombine.high %v29_v12, %v29_v12 }
   0x4   :  { %302 = vmatprep.subr.bf16.mxu0 %v863_v3  ;;  %342 = vmatprep.subr.bf16.mxu1 %v865_v5  ;;  %v50_v16 = vunpack.c.0.s8 %v49_v10 }
   0x5   :  { %303 = vmatpush1.bf16.xpose.msra.mxu0 %v862_v4  ;;  %343 = vmatpush1.bf16.xpose.msra.mxu1 %v864_v6 }
   0x6   :  { %382 = vmatprep.subr.bf16.mxu0 %v867_v13  ;;  %422 = vmatprep.subr.bf16.mxu1 %v869_v14 }
   0x7   :  { %12 = vsyncpa [#allocation5], 0  ;;  %v1014_v17 = vsub.s32 %v50_v16, %v52_v11  ;;  %v30_v18 = vld [vmem:[%s1101_s0 + $0x8] sm:$0xff]  ;;  %v36_v25 = vld [vmem:[%s1102_s1 + $0x20] sm:$0xff]  ;;  %v866_v27 = vcombine.low %v34_v7, %v34_v7  ;;  %v868_v30 = vcombine.low %v35_v8, %v35_v8  ;;  %vm26_vm0 = vcmask 58368  }
   0x8   :  { %v37_v29 = vld [vmem:[%s1102_s1 + $0x28] sm:$0xff]  ;;  %v871_v33 = vcombine.high %v36_v25, %v36_v25  ;;  %v96_v35 = vcombine.high %v30_v18, %v30_v18  ;;  %v38_v40 = vld [vmem:[%s1102_s1 + $0x30] sm:$0xff]  ;;  %v870_v42 = vcombine.low %v36_v25, %v36_v25  ;;  %v39_v43 = vld [vmem:[%s1102_s1 + $0x38] sm:$0xff] }
   0x9   :  { %v54_v19 = vrot.slane %v29_v12, %v1014_v17  ;;  %v61_v20 = vrot.slane %v47_v15, %v1014_v17  ;;  %v103_v24 = vrot.slane %v30_v18, %v1014_v17  ;;  %v873_v37 = vcombine.high %v37_v29, %v37_v29  ;;  %v31_v50 = vld [vmem:[%s1101_s0 + $0x10] sm:$0xff]  ;;  %v40_v53 = vld [vmem:[%s1102_s1 + $0x40] sm:$0xff]  ;;  %v41_v56 = vld [vmem:[%s1102_s1 + $0x48] sm:$0xff] }
   0xa   :  { %v110_v41 = vrot.slane %v96_v35, %v1014_v17  ;;  %v875_v45 = vcombine.high %v38_v40, %v38_v40  ;;  %v872_v46 = vcombine.low %v37_v29, %v37_v29  ;;  %v877_v49 = vcombine.high %v39_v43, %v39_v43  ;;  %v42_v3 = vld [vmem:[%s1102_s1 + $0x50] sm:$0xff]  ;;  %v43_v6 = vld [vmem:[%s1102_s1 + $0x58] sm:$0xff] }
   0xb   :  { %v62_v21 = vcombine.high %v54_v19, %v54_v19  ;;  %v70_v22 = vrot.slane %v54_v19, %v1014_v17  ;;  %v63_v23 = vcombine.high %v61_v20, %v61_v20  ;;  %v111_v34 = vcombine.high %v103_v24, %v103_v24 }
   0xc   :  { %v77_v38 = vrot.slane %v61_v20, %v1014_v17  ;;  %v112_v48 = vcombine.high %v110_v41, %v110_v41  ;;  %v119_v51 = vrot.slane %v103_v24, %v1014_v17  ;;  %v152_v54 = vrot.slane %v31_v50, %v1014_v17 }
   0xd   :  { %v84_v26 = vrot.slane %v62_v21, %v1014_v17  ;;  %v91_v28 = vrot.slane %v63_v23, %v1014_v17  ;;  %v92_v31 = vcombine.high %v70_v22, %v70_v22  ;;  %v133_v39 = vrot.slane %v111_v34, %v1014_v17 }
   0xe   :  { %v93_v44 = vcombine.high %v77_v38, %v77_v38  ;;  %v140_v52 = vrot.slane %v112_v48, %v1014_v17  ;;  %v874_v55 = vcombine.low %v38_v40, %v38_v40  ;;  %v141_v57 = vcombine.high %v119_v51, %v119_v51 }
   0xf   :  { %334 = vmatprep.mubr.bf16.mxu0 %v84_v26  ;;  %v94_v32 = vcombine.high %v84_v26, %v84_v26  ;;  %v95_v36 = vcombine.high %v91_v28, %v91_v28  ;;  %v143_v47 = vcombine.high %v133_v39, %v133_v39  ;;  %v879_v58 = vcombine.high %v40_v53, %v40_v53 }
  0x10   :  { %335 = vmatmul.mubr.bf16.vlgmr.msra.gmra.mrb[0].mxu0 %v70_v22  ;;  %v876_v59 = vcombine.low %v39_v43, %v39_v43  ;;  %v144_v60 = vcombine.high %v140_v52, %v140_v52  ;;  %v160_v61 = vcombine.high %v152_v54, %v152_v54  ;;  %v145_v62 = vcombine.high %v31_v50, %v31_v50 }
  0x11   :  { %383 = vmatpush1.bf16.xpose.msra.mxu0 %v866_v27  ;;  %374 = vmatprep.mubr.bf16.mxu1 %v94_v32  ;;  %v881_v63 = vcombine.high %v41_v56, %v41_v56  ;;  %v126_v0 = vrot.slane %v110_v41, %v1014_v17  ;;  %v878_v5 = vcombine.low %v40_v53, %v40_v53  ;;  %v964_v22 = vmov 0.0  }
  0x12   :  { %375 = vmatmul.mubr.bf16.vlgmr.msra.gmra.mrb[0].mxu1 %v92_v31  ;;  %414 = vmatprep.mubr.bf16.mxu0 %v91_v28  ;;  %v182_v1 = vrot.slane %v160_v61, %v1014_v17  ;;  %v159_v4 = vrot.slane %v145_v62, %v1014_v17  ;;  %v883_v8 = vcombine.high %v42_v3, %v42_v3 }
  0x13   :  { %423 = vmatpush1.bf16.xpose.msra.mxu1 %v868_v30  ;;  %462 = vmatprep.subr.bf16.mxu0 %v871_v33  ;;  %v142_v7 = vcombine.high %v126_v0, %v126_v0  ;;  %v880_v9 = vcombine.low %v41_v56, %v41_v56  ;;  %v885_v12 = vcombine.high %v43_v6, %v43_v6 }
  0x14   :  { %454 = vmatprep.mubr.bf16.mxu1 %v95_v36  ;;  %502 = vmatprep.subr.bf16.mxu1 %v873_v37  ;;  %v192_v10 = vcombine.high %v182_v1, %v182_v1  ;;  %v161_v11 = vcombine.high %v159_v4, %v159_v4  ;;  %v168_v13 = vrot.slane %v152_v54, %v1014_v17 }
  0x15   :  { %v882_v15 = vcombine.low %v42_v3, %v42_v3  ;;  %v884_v18 = vcombine.low %v43_v6, %v43_v6  ;;  %v175_v20 = vrot.slane %v159_v4, %v1014_v17  ;;  %27 = vst.msk [vmem:[#allocation2] sm:$0x3] %vm26_vm0, %v964_v22 }
  0x16   :  { %v189_v14 = vrot.slane %v161_v11, %v1014_v17  ;;  %v190_v16 = vcombine.high %v168_v13, %v168_v13 }
  0x17   :  { %v191_v21 = vcombine.high %v175_v20, %v175_v20 }
  0x18   :  { %415 = vmatmul.mubr.bf16.vlgmr.msra.gmra.mrb[4].mxu0 %v77_v38  ;;  %v193_v19 = vcombine.high %v189_v14, %v189_v14 }
  0x19   :  { %463 = vmatpush1.bf16.xpose.msra.mxu0 %v870_v42  ;;  %494 = vmatprep.mubr.bf16.mxu0 %v133_v39 }
  0x1a   :  { %455 = vmatmul.mubr.bf16.vlgmr.msra.gmra.mrb[4].mxu1 %v93_v44  ;;  %542 = vmatprep.subr.bf16.mxu0 %v875_v45 }
  0x1b   :  { %503 = vmatpush1.bf16.xpose.msra.mxu1 %v872_v46  ;;  %534 = vmatprep.mubr.bf16.mxu1 %v143_v47 }
  0x1c   :  { %582 = vmatprep.subr.bf16.mxu1 %v877_v49 }
  0x20   :  { %495 = vmatmul.mubr.bf16.vlgmr.msra.gmra.mrb[8].mxu0 %v119_v51 }
  0x21   :  { %543 = vmatpush1.bf16.xpose.msra.mxu0 %v874_v55  ;;  %574 = vmatprep.mubr.bf16.mxu0 %v140_v52 }
  0x22   :  { %535 = vmatmul.mubr.bf16.vlgmr.msra.gmra.mrb[8].mxu1 %v141_v57  ;;  %622 = vmatprep.subr.bf16.mxu0 %v879_v58 }
  0x23   :  { %583 = vmatpush1.bf16.xpose.msra.mxu1 %v876_v59  ;;  %614 = vmatprep.mubr.bf16.mxu1 %v144_v60 }
  0x24   :  { %662 = vmatprep.subr.bf16.mxu1 %v881_v63 }
  0x28   :  { %575 = vmatmul.mubr.bf16.vlgmr.msra.gmra.mrb[12].mxu0 %v126_v0 }
  0x29   :  { %623 = vmatpush1.bf16.xpose.msra.mxu0 %v878_v5  ;;  %654 = vmatprep.mubr.bf16.mxu0 %v182_v1 }
  0x2a   :  { %615 = vmatmul.mubr.bf16.vlgmr.msra.gmra.mrb[12].mxu1 %v142_v7  ;;  %702 = vmatprep.subr.bf16.mxu0 %v883_v8 }
  0x2b   :  { %663 = vmatpush1.bf16.xpose.msra.mxu1 %v880_v9  ;;  %694 = vmatprep.mubr.bf16.mxu1 %v192_v10 }
  0x2c   :  { %742 = vmatprep.subr.bf16.mxu1 %v885_v12  ;;  %v28_v12 = vld [vmem:[#allocation2] sm:$0x3] }
  0x30   :  { %655 = vmatmul.mubr.bf16.vlgmr.msra.gmra.mrb[16].mxu0 %v168_v13 }
  0x31   :  { %703 = vmatpush1.bf16.xpose.msra.mxu0 %v882_v15  ;;  %734 = vmatprep.mubr.bf16.mxu0 %v189_v14 }
  0x32   :  { %695 = vmatmul.mubr.bf16.vlgmr.msra.gmra.mrb[16].mxu1 %v190_v16 }
  0x33   :  { %743 = vmatpush1.bf16.xpose.msra.mxu1 %v884_v18  ;;  %774 = vmatprep.mubr.bf16.mxu1 %v193_v19 }
  0x38   :  { %735 = vmatmul.mubr.bf16.vlgmr.msra.gmra.mrb[20].mxu0 %v175_v20 }
  0x3a   :  { %775 = vmatmul.mubr.bf16.vlgmr.msra.gmra.mrb[20].mxu1 %v191_v21  ;;  %v886_v21 = vld [vmem:[%s1103_s2] ss:$0 sm:$0xff]  ;;  %s966_s2 = smov [#allocation3]  }
  0xe3   :  { %v336_v23 = vpop.f32.mrb[0].mxu0 }
  0xe4   :  { %v338_v24 = vpop.f32.mrb[1].mxu0 }
  0xe5   :  { %v339_v25 = vpop.f32.mrb[2].mxu0  ;;  %v376_v26 = vpop.f32.mrb[0].mxu1 }
  0xe6   :  { %v377_v27 = vadd.f32 %v376_v26, %v336_v23  ;;  %v340_v28 = vpop.f32.mrb[3].mxu0  ;;  %v378_v29 = vpop.f32.mrb[1].mxu1  ;;  %v813_v25 = vld [vmem:[%s1104_s3] sm:$0x3]  ;;  %v965_v26 = vmov 0   ;;  %s841_s3 = sshll.u32 %s966_s2, 4  ;;  %s842_s3 = int_to_ptr.vmem [resolvable:$true] %s841_s3 }
  0xe7   :  { %v379_v30 = vpop.f32.mrb[2].mxu1  ;;  %894 = vset.pattern.permute.xlu1 %v965_v26  ;;  %895 = vset.pattern.permute.xlu0 %v965_v26  ;;  %s927_s25 = scalar_lea.vmem %s842_s3, 32  ;;  %p932_p1 = scmp.lt.s32.totalorder %s842_s3, %s842_s3 }
  0xe8   :  { %v380_v31 = vpop.f32.mrb[3].mxu1  ;;  %815 = vperm.xlu1 %894, %v813_v25   ;;  %p928_p0 = scmp.ne.s32.totalorder %s842_s3, %s927_s25  ;;  %p933_p2 = scmp.lt.s32.totalorder %s927_s25, %s927_s25 }
  0xea   :  { %p934_p3 = por %p933_p2, %p932_p1 }
  0xeb   :  { %v416_v32 = vpop.f32.mrb[4].mxu0 }
  0xec   :  { %v417_v17 = vadd.f32 %v416_v32, %v377_v27  ;;  %v418_v33 = vpop.f32.mrb[5].mxu0  ;;  %p935_p4 = pnand %p934_p3, %p928_p0 }
  0xed   :  { %v419_v34 = vpop.f32.mrb[6].mxu0  ;;  %v456_v35 = vpop.f32.mrb[4].mxu1  ;;  %v812_v33 = vand.u32 127, %v51_v2 }
  0xee   :  { %v457_v36 = vadd.f32 %v456_v35, %v417_v17  ;;  %v420_v37 = vpop.f32.mrb[7].mxu0  ;;  %v458_v38 = vpop.f32.mrb[5].mxu1 }
  0xef   :  { %v459_v39 = vpop.f32.mrb[6].mxu1 }
  0xf0   :  { %v460_v40 = vpop.f32.mrb[7].mxu1 }
  0xf3   :  { %v496_v41 = vpop.f32.mrb[8].mxu0 }
  0xf4   :  { %v497_v42 = vadd.f32 %v496_v41, %v457_v36  ;;  %v498_v43 = vpop.f32.mrb[9].mxu0 }
  0xf5   :  { %v499_v44 = vpop.f32.mrb[10].mxu0  ;;  %v536_v45 = vpop.f32.mrb[8].mxu1 }
  0xf6   :  { %v537_v46 = vadd.f32 %v536_v45, %v497_v42  ;;  %v500_v47 = vpop.f32.mrb[11].mxu0  ;;  %v538_v48 = vpop.f32.mrb[9].mxu1 }
  0xf7   :  { %v539_v49 = vpop.f32.mrb[10].mxu1 }
  0xf8   :  { %v540_v50 = vpop.f32.mrb[11].mxu1 }
  0xfb   :  { %v576_v51 = vpop.f32.mrb[12].mxu0 }
  0xfc   :  { %v577_v52 = vadd.f32 %v576_v51, %v537_v46  ;;  %v578_v53 = vpop.f32.mrb[13].mxu0 }
  0xfd   :  { %v579_v54 = vpop.f32.mrb[14].mxu0  ;;  %v616_v55 = vpop.f32.mrb[12].mxu1 }
  0xfe   :  { %v617_v56 = vadd.f32 %v616_v55, %v577_v52  ;;  %v580_v57 = vpop.f32.mrb[15].mxu0  ;;  %v618_v58 = vpop.f32.mrb[13].mxu1 }
  0xff   :  { %v619_v59 = vpop.f32.mrb[14].mxu1 }
 0x100   :  { %v620_v60 = vpop.f32.mrb[15].mxu1 }
 0x103   :  { %v656_v61 = vpop.f32.mrb[16].mxu0 }
 0x104   :  { %v657_v62 = vadd.f32 %v656_v61, %v617_v56  ;;  %v658_v63 = vpop.f32.mrb[17].mxu0 }
 0x105   :  { %v659_v0 = vpop.f32.mrb[18].mxu0  ;;  %v696_v1 = vpop.f32.mrb[16].mxu1 }
 0x106   :  { %v697_v3 = vadd.f32 %v696_v1, %v657_v62  ;;  %v660_v4 = vpop.f32.mrb[19].mxu0  ;;  %v698_v5 = vpop.f32.mrb[17].mxu1 }
 0x107   :  { %v699_v6 = vpop.f32.mrb[18].mxu1 }
 0x108   :  { %v700_v7 = vpop.f32.mrb[19].mxu1 }
 0x10b   :  { %v736_v8 = vpop.f32.mrb[20].mxu0 }
 0x10c   :  { %v737_v9 = vadd.f32 %v736_v8, %v697_v3  ;;  %v738_v10 = vpop.f32.mrb[21].mxu0 }
 0x10d   :  { %v739_v11 = vpop.f32.mrb[22].mxu0  ;;  %v776_v13 = vpop.f32.mrb[20].mxu1 }
 0x10e   :  { %v777_v14 = vadd.f32 %v776_v13, %v737_v9  ;;  %v740_v15 = vpop.f32.mrb[23].mxu0  ;;  %v778_v16 = vpop.f32.mrb[21].mxu1 }
 0x10f   :  { %v779_v18 = vpop.f32.mrb[22].mxu1 }
 0x110   :  { %v782_v19 = vadd.f32 %v777_v14, %v28_v12  ;;  %v780_v20 = vpop.f32.mrb[23].mxu1 }
 0x112   :  { %784 = vst.msk [vmem:[#allocation2] sm:$0x3] %vm26_vm0, %v782_v19 }
 0x119   :  { %v788_v22 = vld [vmem:[#allocation2] sm:$0x3] }
 0x11a   :  { %v796_v23 = vadd.f32 %v886_v21, %v788_v22 }
 0x11c   :  { %v798_v24 = vsel %vm26_vm0, %v796_v23, -inf  ;;  %797 = vst.msk [vmem:[#allocation3] sm:$0x3] %vm26_vm0, %v796_v23 }
 0x11d   :  { %799 = vmax.xlane.f32.xlu0 %v798_v24 }
 0x167   :  { %v816_v35 = vpop.permute.xlu1 %815 }
 0x168   :  { %vm817_vm1 = vcmp.eq.s32.totalorder %v812_v33, %v816_v35 }
 0x1aa   :  { %v800_v27 = vpop.xlane.xlu0 %799 }
 0x1ab   :  { %v801_v28 = vsub.f32 %v796_v23, %v800_v27 }
 0x1ad   :  { %v802_v29 = vmul.f32 1.442695, %v801_v28 }
 0x1af   :  { %923 = vpow2.f32 %v802_v29 }
 0x1b9   :  { %v924_v30 = vpop.eup %923 }
 0x1ba   :  { %v804_v31 = vsel %vm26_vm0, %v924_v30, 0.0 }
 0x1bb   :  { %805 = vadd.xlane.f32.xlu0 %v804_v31 }
 0x248   :  { %v806_v32 = vpop.xlane.xlu0 %805 }
 0x249   :  { %925 = vlog2.f32 %v806_v32 }
 0x253   :  { %v926_v17 = vpop.eup %925 }
 0x254   :  { %v808_v34 = vmul.f32 0.6931472, %v926_v17 }
 0x256   :  { %v809_v36 = vadd.f32 %v808_v34, %v800_v27 }
 0x258   :  { %v810_v37 = vsub.f32 %v796_v23, %v809_v36 }
 0x25a   :  { %v818_v38 = vsel %vm817_vm1, %v810_v37, 0.0 }
 0x25b   :  { %v819_v39 = vsel %vm26_vm0, %v818_v38, 0.0 }
 0x25c   :  { %820 = vadd.xlane.f32.xlu1 %v819_v39 }
 0x25d   :  { %938 = shalt.err (!%p935_p4)
}
 0x25e   :  { %s939_s28 = scalar_lea.hbm %s1105_s4, 32 }
 0x25f   :  { %p940_p5 = scmp.ne.s32.totalorder %s1105_s4, %s939_s28  ;;  %p943_p6 = scmp.lt.u32.totalorder %s939_s28, %s1105_s4 }
 0x261   :  { %p945_p7 = pnand %p943_p6, %p940_p5 }
 0x263   :  { %948 = shalt.err (!%p945_p7)
}
 0x264   :  { %844 = dma.vmem_to_hbm [thread:$0]  %s842_s3, 32, %s1105_s4, [#allocation4]  }
 0x265   :  { %s949_s15 = scalar_lea.hbm %s1106_s5, 16 }
 0x266   :  { %p950_p8 = scmp.ne.s32.totalorder %s1106_s5, %s949_s15  ;;  %p953_p9 = scmp.lt.u32.totalorder %s949_s15, %s1106_s5 }
 0x268   :  { %p955_p10 = pnand %p953_p9, %p950_p8 }
 0x2e9   :  { %v821_v2 = vpop.xlane.xlu1 %820 }
 0x2ea   :  { %v822_v40 = vrot.slane %v821_v2, 4 }
 0x2ec   :  { %v823_v41 = vadd.f32 %v822_v40, %v821_v2 }
 0x2ee   :  { %v824_v42 = vrot.slane %v823_v41, 2 }
 0x2f0   :  { %v825_v43 = vadd.f32 %v824_v42, %v823_v41 }
 0x2f2   :  { %v826_v44 = vrot.slane %v825_v43, 1 }
 0x2f4   :  { %v827_v45 = vadd.f32 %v826_v44, %v825_v43 }
 0x2f6   :  { %887 = vpush %v827_v45 }
 0x327   :  { %s888_s10 = spop %887 }
 0x328   :  { %s829_s11 = ssub.f32 0.0, %s888_s10 }
 0x32a   :  { %s832_s12 = smul.f32 0.5, %s829_s11 }
 0x32c   :  { %834 = sst [smem:[#allocation6]] %s832_s12 }
 0x32d   :  { %958 = shalt.err (!%p955_p10)
}
 0x32e   :  { %s967_s18 = smov [#allocation6]  }
 0x32f   :  { %852 = dma.smem_to_hbm %s967_s18, 16, %s1106_s5, [#allocation5]  }
 0x330   :  { %959 = dma.done.wait [#allocation4], 32  }
 0x331   :  { %960 = vsyncadd [#allocation4], 4294967264 }
 0x332   :  { %961 = dma.done.wait [#allocation5], 16  }
 0x333   :  { %962 = vsyncadd [#allocation5], 4294967280 }
 0x334   :  { %859 = sfence }
 0x335   :  { %860 = vsyncpa [#allocation4], 1 }
 0x336   :  { %861 = vsyncpa [#allocation5], 1 }

</bundles_post_ra>
